<compile_context>
chip_gen: v6e
topology: v6e:2x2x1
jax: 0.10.0
libtpu: 0.0.40
codegen_flags: <defaults>
</compile_context>

<pallas_src>
import math

import jax
import jax.numpy as jnp
from jax.experimental import pallas as pl
from jax.experimental.pallas import tpu as pltpu

# ---------------- problem sizes (small, consistent with the module) ----------
B = 2            # batch
N = 8            # sequence length (tokens)
C = 32           # embedding dim
H = 4            # num heads
HD = C // H      # head dim
MLP = 4 * C      # mlp hidden dim (timm Mlp default ratio 4)
T = B * N        # total tokens processed in one grid step
EPS = 1e-6       # timm ViT uses LayerNorm(eps=1e-6)
SCALE = HD ** -0.5
NEG_BIAS = -1e30  # large finite negative (NaN-safe replacement for -inf mask)


def _layernorm(x, g, b):
    mu = jnp.mean(x, axis=-1, keepdims=True)
    var = jnp.mean((x - mu) ** 2, axis=-1, keepdims=True)
    return (x - mu) * jax.lax.rsqrt(var + EPS) * g + b


def _erf_poly(x):
    # Abramowitz & Stegun 7.1.26, max abs error 1.5e-7.  Uses only
    # abs/compare/select/mul/add/div/exp -> guaranteed Mosaic lowering.
    p = jnp.float32(0.3275911)
    a1 = jnp.float32(0.254829592)
    a2 = jnp.float32(-0.284496736)
    a3 = jnp.float32(1.421413741)
    a4 = jnp.float32(-1.453152027)
    a5 = jnp.float32(1.061405429)
    ax = jnp.abs(x)
    t = 1.0 / (1.0 + p * ax)
    poly = ((((a5 * t + a4) * t + a3) * t + a2) * t + a1) * t
    y = 1.0 - poly * jnp.exp(-ax * ax)
    return jnp.where(x >= 0.0, y, -y)


def _gelu_kernel(x):
    # exact-erf GELU (torch.nn.GELU) via the polynomial erf above
    return 0.5 * x * (1.0 + _erf_poly(x * jnp.float32(1.0 / math.sqrt(2.0))))


def _gelu_exact(x):
    # reference-side exact GELU (plain JAX, outside the kernel)
    return 0.5 * x * (1.0 + jax.lax.erf(x / jnp.sqrt(2.0).astype(x.dtype)))


def block_kernel(x_ref, mask_ref,
                 ln1g_ref, ln1b_ref, wqkv_ref, bqkv_ref, wproj_ref, bproj_ref,
                 ln2g_ref, ln2b_ref, wfc1_ref, bfc1_ref, wfc2_ref, bfc2_ref,
                 o_ref):
    x = x_ref[...]                                      # (T, C), all tokens of all batches

    # One mask select total: block-diagonal 0/1 mask -> additive bias reused by
    # every head.  exp() of (-1e30 - m) underflows to exactly 0, which also
    # reproduces the post-softmax masked_fill(0) of the PyTorch module.
    bias = jnp.where(mask_ref[...] == 0.0,
                     jnp.float32(NEG_BIAS), jnp.float32(0.0))   # (T, T)

    # ---- norm1 ----
    xn = _layernorm(x, ln1g_ref[...], ln1b_ref[...])

    # ---- attention: qkv projection over all 16 tokens at once ----
    qkv = jnp.dot(xn, wqkv_ref[...],
                  preferred_element_type=jnp.float32) + bqkv_ref[...]   # (T, 3C)
    q = qkv[:, 0:C] * SCALE          # pre-scale q (== scaling the scores)
    k = qkv[:, C:2 * C]
    v = qkv[:, 2 * C:3 * C]

    # ---- per-head attention; project-and-accumulate instead of concatenate ----
    wproj = wproj_ref[...]                               # (C, C)
    attn_proj = jnp.zeros((T, C), jnp.float32)
    for h in range(H):                                   # H=4, static unroll
        sl = slice(h * HD, (h + 1) * HD)
        # scores over all token pairs; cross-batch pairs are killed by `bias`
        s = jax.lax.dot_general(q[:, sl], k[:, sl],
                                (((1,), (1,)), ((), ())),
                                preferred_element_type=jnp.float32)     # (T, T)
        s = s + bias
        m = jnp.max(s, axis=-1, keepdims=True)
        p = jnp.exp(s - m)
        p = p / jnp.sum(p, axis=-1, keepdims=True)
        oh = jnp.dot(p, v[:, sl],
                     preferred_element_type=jnp.float32)                # (T, HD)
        # fold head output straight into the output projection (no concat)
        attn_proj = attn_proj + jnp.dot(oh, wproj[sl, :],
                                        preferred_element_type=jnp.float32)

    # ---- output projection bias + residual ----
    x1 = x + attn_proj + bproj_ref[...]

    # ---- norm2 + MLP + residual ----
    x2n = _layernorm(x1, ln2g_ref[...], ln2b_ref[...])
    hdn = jnp.dot(x2n, wfc1_ref[...],
                  preferred_element_type=jnp.float32) + bfc1_ref[...]
    hdn = _gelu_kernel(hdn)
    y = jnp.dot(hdn, wfc2_ref[...],
                preferred_element_type=jnp.float32) + bfc2_ref[...]

    o_ref[...] = (x1 + y).astype(o_ref.dtype)


def block_forward(x, mask, params):
    (ln1g, ln1b, wqkv, bqkv, wproj, bproj,
     ln2g, ln2b, wfc1, bfc1, wfc2, bfc2) = params

    # layout plumbing in the wrapper (free: same row-major memory layout)
    x_flat = x.reshape(T, C)
    # block-diagonal (B*N, B*N) mask: within-batch entries take the user mask,
    # cross-batch entries are 0 (masked), so one kernel handles all batches.
    mask_bd = jnp.einsum('bc,bij->bicj',
                         jnp.eye(B, dtype=mask.dtype), mask).reshape(T, T)

    def full(arr):
        nd = arr.ndim
        return pl.BlockSpec(arr.shape, lambda i, _nd=nd: (0,) * _nd)

    in_specs = [
        full(x_flat), full(mask_bd),
        full(ln1g), full(ln1b), full(wqkv), full(bqkv),
        full(wproj), full(bproj),
        full(ln2g), full(ln2b), full(wfc1), full(bfc1),
        full(wfc2), full(bfc2),
    ]

    out = pl.pallas_call(
        block_kernel,
        out_shape=jax.ShapeDtypeStruct((T, C), jnp.float32),
        grid_spec=pltpu.PrefetchScalarGridSpec(
            num_scalar_prefetch=0,
            grid=(1,),                       # single step: fixed overhead paid once
            in_specs=in_specs,
            out_specs=pl.BlockSpec((T, C), lambda i: (0, 0)),
        ),
        compiler_params=pltpu.CompilerParams(
            dimension_semantics=("arbitrary",)),
    )(x_flat, mask_bd, ln1g, ln1b, wqkv, bqkv, wproj, bproj,
      ln2g, ln2b, wfc1, bfc1, wfc2, bfc2)

    return out.reshape(B, N, C)


# ---------------- pure-JAX reference (PyTorch semantics, no Pallas) ----------
def block_reference(x, mask, params):
    (ln1g, ln1b, wqkv, bqkv, wproj, bproj,
     ln2g, ln2b, wfc1, bfc1, wfc2, bfc2) = params
    xn = _layernorm(x, ln1g, ln1b)
    qkv = xn @ wqkv + bqkv                                   # (B, N, 3C)
    qkv = qkv.reshape(B, N, 3, H, HD).transpose(2, 0, 3, 1, 4)
    q, k, v = qkv[0], qkv[1], qkv[2]                         # (B, H, N, HD)
    s = jnp.einsum('bhqd,bhkd->bhqk', q, k) * SCALE
    mb = jnp.broadcast_to(mask[:, None], s.shape)
    s = jnp.where(mb == 0, -jnp.inf, s)
    p = jax.nn.softmax(s, axis=-1)
    p = jnp.where(mb == 0, 0.0, p)
    o = jnp.einsum('bhqk,bhkd->bhqd', p, v)
    o = o.transpose(0, 2, 1, 3).reshape(B, N, C)
    o = o @ wproj + bproj
    x1 = x + o
    hdn = _gelu_exact(_layernorm(x1, ln2g, ln2b) @ wfc1 + bfc1)
    return x1 + hdn @ wfc2 + bfc2


# ---------------- deterministic parameter init --------------------------------
def init_params(key):
    ks = jax.random.split(key, 12)
    scale_in = lambda fan_in: 1.0 / math.sqrt(fan_in)
    ln1g = 1.0 + 0.1 * jax.random.normal(ks[0], (1, C), jnp.float32)
    ln1b = 0.02 * jax.random.normal(ks[1], (1, C), jnp.float32)
    wqkv = jax.random.normal(ks[2], (C, 3 * C), jnp.float32) * scale_in(C)
    bqkv = jax.random.normal(ks[3], (1, 3 * C), jnp.float32) * 0.02
    wproj = jax.random.normal(ks[4], (C, C), jnp.float32) * scale_in(C)
    bproj = jax.random.normal(ks[5], (1, C), jnp.float32) * 0.02
    ln2g = 1.0 + 0.1 * jax.random.normal(ks[6], (1, C), jnp.float32)
    ln2b = 0.02 * jax.random.normal(ks[7], (1, C), jnp.float32)
    wfc1 = jax.random.normal(ks[8], (C, MLP), jnp.float32) * scale_in(C)
    bfc1 = jax.random.normal(ks[9], (1, MLP), jnp.float32) * 0.02
    wfc2 = jax.random.normal(ks[10], (MLP, C), jnp.float32) * scale_in(MLP)
    bfc2 = jax.random.normal(ks[11], (1, C), jnp.float32) * 0.02
    return (ln1g, ln1b, wqkv, bqkv, wproj, bproj,
            ln2g, ln2b, wfc1, bfc1, wfc2, bfc2)


if __name__ == "__main__":
    key = jax.random.PRNGKey(0)
    k_x, k_m, k_p = jax.random.split(key, 3)

    x = jax.random.normal(k_x, (B, N, C), jnp.float32)
    # binary mask (B, N, N); keep the diagonal so every row has >=1 valid key
    # (the PyTorch -inf path is NaN for fully-masked rows; kernel itself is safe)
    mask = (jax.random.uniform(k_m, (B, N, N)) > 0.3).astype(jnp.float32)
    mask = jnp.maximum(mask, jnp.eye(N, dtype=jnp.float32)[None])

    params = init_params(k_p)

    out = jax.block_until_ready(jax.jit(block_forward)(x, mask, params))
    ref = block_reference(x, mask, params)

    assert out.shape == (B, N, C)
    err = jnp.max(jnp.abs(out - ref))
    assert jnp.allclose(out, ref, atol=1e-4, rtol=1e-4), f"max abs err = {err}"

    print("KERNEL_OK")
</pallas_src>

<mosaic_0001>
module attributes {stable_mosaic.version = 11 : i64} {
  func.func @block_kernel(%arg0: i32, %arg1: memref<16x32xf32, #tpu.memory_space<vmem>>, %arg2: memref<16x16xf32, #tpu.memory_space<vmem>>, %arg3: memref<1x32xf32, #tpu.memory_space<vmem>>, %arg4: memref<1x32xf32, #tpu.memory_space<vmem>>, %arg5: memref<32x96xf32, #tpu.memory_space<vmem>>, %arg6: memref<1x96xf32, #tpu.memory_space<vmem>>, %arg7: memref<32x32xf32, #tpu.memory_space<vmem>>, %arg8: memref<1x32xf32, #tpu.memory_space<vmem>>, %arg9: memref<1x32xf32, #tpu.memory_space<vmem>>, %arg10: memref<1x32xf32, #tpu.memory_space<vmem>>, %arg11: memref<32x128xf32, #tpu.memory_space<vmem>>, %arg12: memref<1x128xf32, #tpu.memory_space<vmem>>, %arg13: memref<128x32xf32, #tpu.memory_space<vmem>>, %arg14: memref<1x32xf32, #tpu.memory_space<vmem>>, %arg15: memref<16x32xf32, #tpu.memory_space<vmem>>) attributes {dimension_semantics = [#tpu.dimension_semantics<arbitrary>], iteration_bounds = array<i64: 1>, scalar_prefetch = 0 : i64, scratch_operands = 0 : i64, tpu.core_type = #tpu.core_type<tc>, window_params = [{pipeline_mode = #tpu.pipeline_mode<synchronous>, transform_indices = @transform_0, window_bounds = array<i64: 16, 32>}, {pipeline_mode = #tpu.pipeline_mode<synchronous>, transform_indices = @transform_1, window_bounds = array<i64: 16, 16>}, {pipeline_mode = #tpu.pipeline_mode<synchronous>, transform_indices = @transform_2, window_bounds = array<i64: 1, 32>}, {pipeline_mode = #tpu.pipeline_mode<synchronous>, transform_indices = @transform_3, window_bounds = array<i64: 1, 32>}, {pipeline_mode = #tpu.pipeline_mode<synchronous>, transform_indices = @transform_4, window_bounds = array<i64: 32, 96>}, {pipeline_mode = #tpu.pipeline_mode<synchronous>, transform_indices = @transform_5, window_bounds = array<i64: 1, 96>}, {pipeline_mode = #tpu.pipeline_mode<synchronous>, transform_indices = @transform_6, window_bounds = array<i64: 32, 32>}, {pipeline_mode = #tpu.pipeline_mode<synchronous>, transform_indices = @transform_7, window_bounds = array<i64: 1, 32>}, {pipeline_mode = #tpu.pipeline_mode<synchronous>, transform_indices = @transform_8, window_bounds = array<i64: 1, 32>}, {pipeline_mode = #tpu.pipeline_mode<synchronous>, transform_indices = @transform_9, window_bounds = array<i64: 1, 32>}, {pipeline_mode = #tpu.pipeline_mode<synchronous>, transform_indices = @transform_10, window_bounds = array<i64: 32, 128>}, {pipeline_mode = #tpu.pipeline_mode<synchronous>, transform_indices = @transform_11, window_bounds = array<i64: 1, 128>}, {pipeline_mode = #tpu.pipeline_mode<synchronous>, transform_indices = @transform_12, window_bounds = array<i64: 128, 32>}, {pipeline_mode = #tpu.pipeline_mode<synchronous>, transform_indices = @transform_13, window_bounds = array<i64: 1, 32>}, {pipeline_mode = #tpu.pipeline_mode<synchronous>, transform_indices = @transform_14, window_bounds = array<i64: 16, 32>}]} {
    %c0 = arith.constant 0 : index
    %c0_0 = arith.constant 0 : index
    %0 = vector.load %arg1[%c0, %c0_0] : memref<16x32xf32, #tpu.memory_space<vmem>>, vector<16x32xf32>
    %c0_1 = arith.constant 0 : index
    %c0_2 = arith.constant 0 : index
    %1 = vector.load %arg2[%c0_1, %c0_2] : memref<16x16xf32, #tpu.memory_space<vmem>>, vector<16x16xf32>
    %cst = arith.constant 0.000000e+00 : f32
    %2 = vector.broadcast %cst : f32 to vector<16x16xf32>
    %3 = arith.cmpf oeq, %1, %2 : vector<16x16xf32>
    %cst_3 = arith.constant -1.000000e+30 : f32
    %cst_4 = arith.constant 0.000000e+00 : f32
    %4 = vector.broadcast %cst_3 : f32 to vector<16x16xf32>
    %5 = vector.broadcast %cst_4 : f32 to vector<16x16xf32>
    %6 = arith.select %3, %4, %5 : vector<16x16xi1>, vector<16x16xf32>
    %c0_5 = arith.constant 0 : index
    %c0_6 = arith.constant 0 : index
    %7 = vector.load %arg3[%c0_5, %c0_6] : memref<1x32xf32, #tpu.memory_space<vmem>>, vector<1x32xf32>
    %c0_7 = arith.constant 0 : index
    %c0_8 = arith.constant 0 : index
    %8 = vector.load %arg4[%c0_7, %c0_8] : memref<1x32xf32, #tpu.memory_space<vmem>>, vector<1x32xf32>
    %cst_9 = arith.constant dense<0.000000e+00> : vector<16xf32>
    %9 = vector.multi_reduction <add>, %0, %cst_9 [1] : vector<16x32xf32> to vector<16xf32>
    %10 = vector.shape_cast %9 : vector<16xf32> to vector<16x1xf32>
    %cst_10 = arith.constant 3.200000e+01 : f32
    %11 = vector.broadcast %cst_10 : f32 to vector<16x1xf32>
    %12 = arith.divf %10, %11 : vector<16x1xf32>
    %13 = vector.broadcast %12 : vector<16x1xf32> to vector<16x32xf32>
    %14 = arith.subf %0, %13 : vector<16x32xf32>
    %15 = arith.mulf %14, %14 : vector<16x32xf32>
    %cst_11 = arith.constant dense<0.000000e+00> : vector<16xf32>
    %16 = vector.multi_reduction <add>, %15, %cst_11 [1] : vector<16x32xf32> to vector<16xf32>
    %17 = vector.shape_cast %16 : vector<16xf32> to vector<16x1xf32>
    %cst_12 = arith.constant 3.200000e+01 : f32
    %18 = vector.broadcast %cst_12 : f32 to vector<16x1xf32>
    %19 = arith.divf %17, %18 : vector<16x1xf32>
    %20 = vector.broadcast %12 : vector<16x1xf32> to vector<16x32xf32>
    %21 = arith.subf %0, %20 : vector<16x32xf32>
    %cst_13 = arith.constant 9.99999997E-7 : f32
    %22 = vector.broadcast %cst_13 : f32 to vector<16x1xf32>
    %23 = arith.addf %19, %22 : vector<16x1xf32>
    %24 = math.rsqrt %23 : vector<16x1xf32>
    %25 = vector.broadcast %24 : vector<16x1xf32> to vector<16x32xf32>
    %26 = arith.mulf %21, %25 : vector<16x32xf32>
    %27 = vector.broadcast %7 : vector<1x32xf32> to vector<16x32xf32>
    %28 = arith.mulf %26, %27 : vector<16x32xf32>
    %29 = vector.broadcast %8 : vector<1x32xf32> to vector<16x32xf32>
    %30 = arith.addf %28, %29 : vector<16x32xf32>
    %c0_14 = arith.constant 0 : index
    %c0_15 = arith.constant 0 : index
    %31 = vector.load %arg5[%c0_14, %c0_15] : memref<32x96xf32, #tpu.memory_space<vmem>>, vector<32x96xf32>
    %cst_16 = arith.constant dense<0.000000e+00> : vector<16x96xf32>
    %32 = tpu.matmul %30, %31, %cst_16 {dimension_numbers = #tpu.dot_dimension_numbers<[1], [0], [0], [1], [0, 0, 1, 1], [], []>} : vector<16x32xf32>, vector<32x96xf32>, vector<16x96xf32> -> vector<16x96xf32>
    %c0_17 = arith.constant 0 : index
    %c0_18 = arith.constant 0 : index
    %33 = vector.load %arg6[%c0_17, %c0_18] : memref<1x96xf32, #tpu.memory_space<vmem>>, vector<1x96xf32>
    %34 = vector.broadcast %33 : vector<1x96xf32> to vector<16x96xf32>
    %35 = arith.addf %32, %34 : vector<16x96xf32>
    %36 = vector.extract_strided_slice %35 {offsets = [0, 0], sizes = [16, 32], strides = [1, 1]} : vector<16x96xf32> to vector<16x32xf32>
    %cst_19 = arith.constant 0.353553385 : f32
    %37 = vector.broadcast %cst_19 : f32 to vector<16x32xf32>
    %38 = arith.mulf %36, %37 : vector<16x32xf32>
    %39 = vector.extract_strided_slice %35 {offsets = [0, 32], sizes = [16, 32], strides = [1, 1]} : vector<16x96xf32> to vector<16x32xf32>
    %40 = vector.extract_strided_slice %35 {offsets = [0, 64], sizes = [16, 32], strides = [1, 1]} : vector<16x96xf32> to vector<16x32xf32>
    %c0_20 = arith.constant 0 : index
    %c0_21 = arith.constant 0 : index
    %41 = vector.load %arg7[%c0_20, %c0_21] : memref<32x32xf32, #tpu.memory_space<vmem>>, vector<32x32xf32>
    %cst_22 = arith.constant 0.000000e+00 : f32
    %42 = vector.broadcast %cst_22 : f32 to vector<16x32xf32>
    %43 = vector.extract_strided_slice %38 {offsets = [0, 0], sizes = [16, 8], strides = [1, 1]} : vector<16x32xf32> to vector<16x8xf32>
    %44 = vector.extract_strided_slice %39 {offsets = [0, 0], sizes = [16, 8], strides = [1, 1]} : vector<16x32xf32> to vector<16x8xf32>
    %cst_23 = arith.constant dense<0.000000e+00> : vector<16x16xf32>
    %45 = tpu.matmul %43, %44, %cst_23 {dimension_numbers = #tpu.dot_dimension_numbers<[1], [1], [0], [0], [0, 0, 1, 0], [], []>} : vector<16x8xf32>, vector<16x8xf32>, vector<16x16xf32> -> vector<16x16xf32>
    %46 = arith.addf %45, %6 : vector<16x16xf32>
    %cst_24 = arith.constant dense<0xFF800000> : vector<16xf32>
    %47 = vector.multi_reduction <maximumf>, %46, %cst_24 [1] : vector<16x16xf32> to vector<16xf32>
    %48 = vector.shape_cast %47 : vector<16xf32> to vector<16x1xf32>
    %49 = vector.broadcast %48 : vector<16x1xf32> to vector<16x16xf32>
    %50 = arith.subf %46, %49 : vector<16x16xf32>
    %51 = math.exp %50 : vector<16x16xf32>
    %cst_25 = arith.constant dense<0.000000e+00> : vector<16xf32>
    %52 = vector.multi_reduction <add>, %51, %cst_25 [1] : vector<16x16xf32> to vector<16xf32>
    %53 = vector.shape_cast %52 : vector<16xf32> to vector<16x1xf32>
    %54 = vector.broadcast %53 : vector<16x1xf32> to vector<16x16xf32>
    %55 = arith.divf %51, %54 : vector<16x16xf32>
    %56 = vector.extract_strided_slice %40 {offsets = [0, 0], sizes = [16, 8], strides = [1, 1]} : vector<16x32xf32> to vector<16x8xf32>
    %cst_26 = arith.constant dense<0.000000e+00> : vector<16x8xf32>
    %57 = tpu.matmul %55, %56, %cst_26 {dimension_numbers = #tpu.dot_dimension_numbers<[1], [0], [0], [1], [0, 0, 1, 1], [], []>} : vector<16x16xf32>, vector<16x8xf32>, vector<16x8xf32> -> vector<16x8xf32>
    %58 = vector.extract_strided_slice %41 {offsets = [0, 0], sizes = [8, 32], strides = [1, 1]} : vector<32x32xf32> to vector<8x32xf32>
    %cst_27 = arith.constant dense<0.000000e+00> : vector<16x32xf32>
    %59 = tpu.matmul %57, %58, %cst_27 {dimension_numbers = #tpu.dot_dimension_numbers<[1], [0], [0], [1], [0, 0, 1, 1], [], []>} : vector<16x8xf32>, vector<8x32xf32>, vector<16x32xf32> -> vector<16x32xf32>
    %60 = arith.addf %42, %59 : vector<16x32xf32>
    %61 = vector.extract_strided_slice %38 {offsets = [0, 8], sizes = [16, 8], strides = [1, 1]} : vector<16x32xf32> to vector<16x8xf32>
    %62 = vector.extract_strided_slice %39 {offsets = [0, 8], sizes = [16, 8], strides = [1, 1]} : vector<16x32xf32> to vector<16x8xf32>
    %cst_28 = arith.constant dense<0.000000e+00> : vector<16x16xf32>
    %63 = tpu.matmul %61, %62, %cst_28 {dimension_numbers = #tpu.dot_dimension_numbers<[1], [1], [0], [0], [0, 0, 1, 0], [], []>} : vector<16x8xf32>, vector<16x8xf32>, vector<16x16xf32> -> vector<16x16xf32>
    %64 = arith.addf %63, %6 : vector<16x16xf32>
    %cst_29 = arith.constant dense<0xFF800000> : vector<16xf32>
    %65 = vector.multi_reduction <maximumf>, %64, %cst_29 [1] : vector<16x16xf32> to vector<16xf32>
    %66 = vector.shape_cast %65 : vector<16xf32> to vector<16x1xf32>
    %67 = vector.broadcast %66 : vector<16x1xf32> to vector<16x16xf32>
    %68 = arith.subf %64, %67 : vector<16x16xf32>
    %69 = math.exp %68 : vector<16x16xf32>
    %cst_30 = arith.constant dense<0.000000e+00> : vector<16xf32>
    %70 = vector.multi_reduction <add>, %69, %cst_30 [1] : vector<16x16xf32> to vector<16xf32>
    %71 = vector.shape_cast %70 : vector<16xf32> to vector<16x1xf32>
    %72 = vector.broadcast %71 : vector<16x1xf32> to vector<16x16xf32>
    %73 = arith.divf %69, %72 : vector<16x16xf32>
    %74 = vector.extract_strided_slice %40 {offsets = [0, 8], sizes = [16, 8], strides = [1, 1]} : vector<16x32xf32> to vector<16x8xf32>
    %cst_31 = arith.constant dense<0.000000e+00> : vector<16x8xf32>
    %75 = tpu.matmul %73, %74, %cst_31 {dimension_numbers = #tpu.dot_dimension_numbers<[1], [0], [0], [1], [0, 0, 1, 1], [], []>} : vector<16x16xf32>, vector<16x8xf32>, vector<16x8xf32> -> vector<16x8xf32>
    %76 = vector.extract_strided_slice %41 {offsets = [8, 0], sizes = [8, 32], strides = [1, 1]} : vector<32x32xf32> to vector<8x32xf32>
    %cst_32 = arith.constant dense<0.000000e+00> : vector<16x32xf32>
    %77 = tpu.matmul %75, %76, %cst_32 {dimension_numbers = #tpu.dot_dimension_numbers<[1], [0], [0], [1], [0, 0, 1, 1], [], []>} : vector<16x8xf32>, vector<8x32xf32>, vector<16x32xf32> -> vector<16x32xf32>
    %78 = arith.addf %60, %77 : vector<16x32xf32>
    %79 = vector.extract_strided_slice %38 {offsets = [0, 16], sizes = [16, 8], strides = [1, 1]} : vector<16x32xf32> to vector<16x8xf32>
    %80 = vector.extract_strided_slice %39 {offsets = [0, 16], sizes = [16, 8], strides = [1, 1]} : vector<16x32xf32> to vector<16x8xf32>
    %cst_33 = arith.constant dense<0.000000e+00> : vector<16x16xf32>
    %81 = tpu.matmul %79, %80, %cst_33 {dimension_numbers = #tpu.dot_dimension_numbers<[1], [1], [0], [0], [0, 0, 1, 0], [], []>} : vector<16x8xf32>, vector<16x8xf32>, vector<16x16xf32> -> vector<16x16xf32>
    %82 = arith.addf %81, %6 : vector<16x16xf32>
    %cst_34 = arith.constant dense<0xFF800000> : vector<16xf32>
    %83 = vector.multi_reduction <maximumf>, %82, %cst_34 [1] : vector<16x16xf32> to vector<16xf32>
    %84 = vector.shape_cast %83 : vector<16xf32> to vector<16x1xf32>
    %85 = vector.broadcast %84 : vector<16x1xf32> to vector<16x16xf32>
    %86 = arith.subf %82, %85 : vector<16x16xf32>
    %87 = math.exp %86 : vector<16x16xf32>
    %cst_35 = arith.constant dense<0.000000e+00> : vector<16xf32>
    %88 = vector.multi_reduction <add>, %87, %cst_35 [1] : vector<16x16xf32> to vector<16xf32>
    %89 = vector.shape_cast %88 : vector<16xf32> to vector<16x1xf32>
    %90 = vector.broadcast %89 : vector<16x1xf32> to vector<16x16xf32>
    %91 = arith.divf %87, %90 : vector<16x16xf32>
    %92 = vector.extract_strided_slice %40 {offsets = [0, 16], sizes = [16, 8], strides = [1, 1]} : vector<16x32xf32> to vector<16x8xf32>
    %cst_36 = arith.constant dense<0.000000e+00> : vector<16x8xf32>
    %93 = tpu.matmul %91, %92, %cst_36 {dimension_numbers = #tpu.dot_dimension_numbers<[1], [0], [0], [1], [0, 0, 1, 1], [], []>} : vector<16x16xf32>, vector<16x8xf32>, vector<16x8xf32> -> vector<16x8xf32>
    %94 = vector.extract_strided_slice %41 {offsets = [16, 0], sizes = [8, 32], strides = [1, 1]} : vector<32x32xf32> to vector<8x32xf32>
    %cst_37 = arith.constant dense<0.000000e+00> : vector<16x32xf32>
    %95 = tpu.matmul %93, %94, %cst_37 {dimension_numbers = #tpu.dot_dimension_numbers<[1], [0], [0], [1], [0, 0, 1, 1], [], []>} : vector<16x8xf32>, vector<8x32xf32>, vector<16x32xf32> -> vector<16x32xf32>
    %96 = arith.addf %78, %95 : vector<16x32xf32>
    %97 = vector.extract_strided_slice %38 {offsets = [0, 24], sizes = [16, 8], strides = [1, 1]} : vector<16x32xf32> to vector<16x8xf32>
    %98 = vector.extract_strided_slice %39 {offsets = [0, 24], sizes = [16, 8], strides = [1, 1]} : vector<16x32xf32> to vector<16x8xf32>
    %cst_38 = arith.constant dense<0.000000e+00> : vector<16x16xf32>
    %99 = tpu.matmul %97, %98, %cst_38 {dimension_numbers = #tpu.dot_dimension_numbers<[1], [1], [0], [0], [0, 0, 1, 0], [], []>} : vector<16x8xf32>, vector<16x8xf32>, vector<16x16xf32> -> vector<16x16xf32>
    %100 = arith.addf %99, %6 : vector<16x16xf32>
    %cst_39 = arith.constant dense<0xFF800000> : vector<16xf32>
    %101 = vector.multi_reduction <maximumf>, %100, %cst_39 [1] : vector<16x16xf32> to vector<16xf32>
    %102 = vector.shape_cast %101 : vector<16xf32> to vector<16x1xf32>
    %103 = vector.broadcast %102 : vector<16x1xf32> to vector<16x16xf32>
    %104 = arith.subf %100, %103 : vector<16x16xf32>
    %105 = math.exp %104 : vector<16x16xf32>
    %cst_40 = arith.constant dense<0.000000e+00> : vector<16xf32>
    %106 = vector.multi_reduction <add>, %105, %cst_40 [1] : vector<16x16xf32> to vector<16xf32>
    %107 = vector.shape_cast %106 : vector<16xf32> to vector<16x1xf32>
    %108 = vector.broadcast %107 : vector<16x1xf32> to vector<16x16xf32>
    %109 = arith.divf %105, %108 : vector<16x16xf32>
    %110 = vector.extract_strided_slice %40 {offsets = [0, 24], sizes = [16, 8], strides = [1, 1]} : vector<16x32xf32> to vector<16x8xf32>
    %cst_41 = arith.constant dense<0.000000e+00> : vector<16x8xf32>
    %111 = tpu.matmul %109, %110, %cst_41 {dimension_numbers = #tpu.dot_dimension_numbers<[1], [0], [0], [1], [0, 0, 1, 1], [], []>} : vector<16x16xf32>, vector<16x8xf32>, vector<16x8xf32> -> vector<16x8xf32>
    %112 = vector.extract_strided_slice %41 {offsets = [24, 0], sizes = [8, 32], strides = [1, 1]} : vector<32x32xf32> to vector<8x32xf32>
    %cst_42 = arith.constant dense<0.000000e+00> : vector<16x32xf32>
    %113 = tpu.matmul %111, %112, %cst_42 {dimension_numbers = #tpu.dot_dimension_numbers<[1], [0], [0], [1], [0, 0, 1, 1], [], []>} : vector<16x8xf32>, vector<8x32xf32>, vector<16x32xf32> -> vector<16x32xf32>
    %114 = arith.addf %96, %113 : vector<16x32xf32>
    %115 = arith.addf %0, %114 : vector<16x32xf32>
    %c0_43 = arith.constant 0 : index
    %c0_44 = arith.constant 0 : index
    %116 = vector.load %arg8[%c0_43, %c0_44] : memref<1x32xf32, #tpu.memory_space<vmem>>, vector<1x32xf32>
    %117 = vector.broadcast %116 : vector<1x32xf32> to vector<16x32xf32>
    %118 = arith.addf %115, %117 : vector<16x32xf32>
    %c0_45 = arith.constant 0 : index
    %c0_46 = arith.constant 0 : index
    %119 = vector.load %arg9[%c0_45, %c0_46] : memref<1x32xf32, #tpu.memory_space<vmem>>, vector<1x32xf32>
    %c0_47 = arith.constant 0 : index
    %c0_48 = arith.constant 0 : index
    %120 = vector.load %arg10[%c0_47, %c0_48] : memref<1x32xf32, #tpu.memory_space<vmem>>, vector<1x32xf32>
    %cst_49 = arith.constant dense<0.000000e+00> : vector<16xf32>
    %121 = vector.multi_reduction <add>, %118, %cst_49 [1] : vector<16x32xf32> to vector<16xf32>
    %122 = vector.shape_cast %121 : vector<16xf32> to vector<16x1xf32>
    %cst_50 = arith.constant 3.200000e+01 : f32
    %123 = vector.broadcast %cst_50 : f32 to vector<16x1xf32>
    %124 = arith.divf %122, %123 : vector<16x1xf32>
    %125 = vector.broadcast %124 : vector<16x1xf32> to vector<16x32xf32>
    %126 = arith.subf %118, %125 : vector<16x32xf32>
    %127 = arith.mulf %126, %126 : vector<16x32xf32>
    %cst_51 = arith.constant dense<0.000000e+00> : vector<16xf32>
    %128 = vector.multi_reduction <add>, %127, %cst_51 [1] : vector<16x32xf32> to vector<16xf32>
    %129 = vector.shape_cast %128 : vector<16xf32> to vector<16x1xf32>
    %cst_52 = arith.constant 3.200000e+01 : f32
    %130 = vector.broadcast %cst_52 : f32 to vector<16x1xf32>
    %131 = arith.divf %129, %130 : vector<16x1xf32>
    %132 = vector.broadcast %124 : vector<16x1xf32> to vector<16x32xf32>
    %133 = arith.subf %118, %132 : vector<16x32xf32>
    %cst_53 = arith.constant 9.99999997E-7 : f32
    %134 = vector.broadcast %cst_53 : f32 to vector<16x1xf32>
    %135 = arith.addf %131, %134 : vector<16x1xf32>
    %136 = math.rsqrt %135 : vector<16x1xf32>
    %137 = vector.broadcast %136 : vector<16x1xf32> to vector<16x32xf32>
    %138 = arith.mulf %133, %137 : vector<16x32xf32>
    %139 = vector.broadcast %119 : vector<1x32xf32> to vector<16x32xf32>
    %140 = arith.mulf %138, %139 : vector<16x32xf32>
    %141 = vector.broadcast %120 : vector<1x32xf32> to vector<16x32xf32>
    %142 = arith.addf %140, %141 : vector<16x32xf32>
    %c0_54 = arith.constant 0 : index
    %c0_55 = arith.constant 0 : index
    %143 = vector.load %arg11[%c0_54, %c0_55] : memref<32x128xf32, #tpu.memory_space<vmem>>, vector<32x128xf32>
    %cst_56 = arith.constant dense<0.000000e+00> : vector<16x128xf32>
    %144 = tpu.matmul %142, %143, %cst_56 {dimension_numbers = #tpu.dot_dimension_numbers<[1], [0], [0], [1], [0, 0, 1, 1], [], []>} : vector<16x32xf32>, vector<32x128xf32>, vector<16x128xf32> -> vector<16x128xf32>
    %c0_57 = arith.constant 0 : index
    %c0_58 = arith.constant 0 : index
    %145 = vector.load %arg12[%c0_57, %c0_58] : memref<1x128xf32, #tpu.memory_space<vmem>>, vector<1x128xf32>
    %146 = vector.broadcast %145 : vector<1x128xf32> to vector<16x128xf32>
    %147 = arith.addf %144, %146 : vector<16x128xf32>
    %cst_59 = arith.constant 5.000000e-01 : f32
    %148 = vector.broadcast %cst_59 : f32 to vector<16x128xf32>
    %149 = arith.mulf %148, %147 : vector<16x128xf32>
    %cst_60 = arith.constant 0.707106769 : f32
    %150 = vector.broadcast %cst_60 : f32 to vector<16x128xf32>
    %151 = arith.mulf %147, %150 : vector<16x128xf32>
    %152 = math.absf %151 : vector<16x128xf32>
    %cst_61 = arith.constant 0.327591091 : f32
    %153 = vector.broadcast %cst_61 : f32 to vector<16x128xf32>
    %154 = arith.mulf %153, %152 : vector<16x128xf32>
    %cst_62 = arith.constant 1.000000e+00 : f32
    %155 = vector.broadcast %cst_62 : f32 to vector<16x128xf32>
    %156 = arith.addf %155, %154 : vector<16x128xf32>
    %cst_63 = arith.constant 1.000000e+00 : f32
    %157 = vector.broadcast %cst_63 : f32 to vector<16x128xf32>
    %158 = arith.divf %157, %156 : vector<16x128xf32>
    %cst_64 = arith.constant 1.06140542 : f32
    %159 = vector.broadcast %cst_64 : f32 to vector<16x128xf32>
    %160 = arith.mulf %159, %158 : vector<16x128xf32>
    %cst_65 = arith.constant -1.45315206 : f32
    %161 = vector.broadcast %cst_65 : f32 to vector<16x128xf32>
    %162 = arith.addf %160, %161 : vector<16x128xf32>
    %163 = arith.mulf %162, %158 : vector<16x128xf32>
    %cst_66 = arith.constant 1.42141378 : f32
    %164 = vector.broadcast %cst_66 : f32 to vector<16x128xf32>
    %165 = arith.addf %163, %164 : vector<16x128xf32>
    %166 = arith.mulf %165, %158 : vector<16x128xf32>
    %cst_67 = arith.constant -0.284496725 : f32
    %167 = vector.broadcast %cst_67 : f32 to vector<16x128xf32>
    %168 = arith.addf %166, %167 : vector<16x128xf32>
    %169 = arith.mulf %168, %158 : vector<16x128xf32>
    %cst_68 = arith.constant 0.254829586 : f32
    %170 = vector.broadcast %cst_68 : f32 to vector<16x128xf32>
    %171 = arith.addf %169, %170 : vector<16x128xf32>
    %172 = arith.mulf %171, %158 : vector<16x128xf32>
    %cst_69 = arith.constant 0.000000e+00 : f32
    %173 = vector.broadcast %cst_69 : f32 to vector<16x128xf32>
    %174 = arith.subf %173, %152 : vector<16x128xf32>
    %175 = arith.mulf %174, %152 : vector<16x128xf32>
    %176 = math.exp %175 : vector<16x128xf32>
    %177 = arith.mulf %172, %176 : vector<16x128xf32>
    %cst_70 = arith.constant 1.000000e+00 : f32
    %178 = vector.broadcast %cst_70 : f32 to vector<16x128xf32>
    %179 = arith.subf %178, %177 : vector<16x128xf32>
    %cst_71 = arith.constant 0.000000e+00 : f32
    %180 = vector.broadcast %cst_71 : f32 to vector<16x128xf32>
    %181 = arith.cmpf oge, %151, %180 : vector<16x128xf32>
    %cst_72 = arith.constant 0.000000e+00 : f32
    %182 = vector.broadcast %cst_72 : f32 to vector<16x128xf32>
    %183 = arith.subf %182, %179 : vector<16x128xf32>
    %184 = arith.select %181, %179, %183 : vector<16x128xi1>, vector<16x128xf32>
    %cst_73 = arith.constant 1.000000e+00 : f32
    %185 = vector.broadcast %cst_73 : f32 to vector<16x128xf32>
    %186 = arith.addf %185, %184 : vector<16x128xf32>
    %187 = arith.mulf %149, %186 : vector<16x128xf32>
    %c0_74 = arith.constant 0 : index
    %c0_75 = arith.constant 0 : index
    %188 = vector.load %arg13[%c0_74, %c0_75] : memref<128x32xf32, #tpu.memory_space<vmem>>, vector<128x32xf32>
    %cst_76 = arith.constant dense<0.000000e+00> : vector<16x32xf32>
    %189 = tpu.matmul %187, %188, %cst_76 {dimension_numbers = #tpu.dot_dimension_numbers<[1], [0], [0], [1], [0, 0, 1, 1], [], []>} : vector<16x128xf32>, vector<128x32xf32>, vector<16x32xf32> -> vector<16x32xf32>
    %c0_77 = arith.constant 0 : index
    %c0_78 = arith.constant 0 : index
    %190 = vector.load %arg14[%c0_77, %c0_78] : memref<1x32xf32, #tpu.memory_space<vmem>>, vector<1x32xf32>
    %191 = vector.broadcast %190 : vector<1x32xf32> to vector<16x32xf32>
    %192 = arith.addf %189, %191 : vector<16x32xf32>
    %193 = arith.addf %118, %192 : vector<16x32xf32>
    %c0_79 = arith.constant 0 : index
    %c0_80 = arith.constant 0 : index
    %194 = vector.load %arg15[%c0_79, %c0_80] : memref<16x32xf32, #tpu.memory_space<vmem>>, vector<16x32xf32>
    tpu.vector_store %arg15[%c0_79, %c0_80], %193 {strides = array<i32>} : memref<16x32xf32, #tpu.memory_space<vmem>>, vector<16x32xf32>,
    return
  }
  func.func @transform_0(%arg0: i32) -> (i32, i32) {
    %c0_i32 = arith.constant 0 : i32
    %c0_i32_0 = arith.constant 0 : i32
    %c0_i32_1 = arith.constant 0 : i32
    return %c0_i32, %c0_i32_0 : i32, i32
  }
  func.func @transform_1(%arg0: i32) -> (i32, i32) {
    %c0_i32 = arith.constant 0 : i32
    %c0_i32_0 = arith.constant 0 : i32
    %c0_i32_1 = arith.constant 0 : i32
    return %c0_i32, %c0_i32_0 : i32, i32
  }
  func.func @transform_2(%arg0: i32) -> (i32, i32) {
    %c0_i32 = arith.constant 0 : i32
    %c0_i32_0 = arith.constant 0 : i32
    %c0_i32_1 = arith.constant 0 : i32
    return %c0_i32, %c0_i32_0 : i32, i32
  }
  func.func @transform_3(%arg0: i32) -> (i32, i32) {
    %c0_i32 = arith.constant 0 : i32
    %c0_i32_0 = arith.constant 0 : i32
    %c0_i32_1 = arith.constant 0 : i32
    return %c0_i32, %c0_i32_0 : i32, i32
  }
  func.func @transform_4(%arg0: i32) -> (i32, i32) {
    %c0_i32 = arith.constant 0 : i32
    %c0_i32_0 = arith.constant 0 : i32
    %c0_i32_1 = arith.constant 0 : i32
    return %c0_i32, %c0_i32_0 : i32, i32
  }
  func.func @transform_5(%arg0: i32) -> (i32, i32) {
    %c0_i32 = arith.constant 0 : i32
    %c0_i32_0 = arith.constant 0 : i32
    %c0_i32_1 = arith.constant 0 : i32
    return %c0_i32, %c0_i32_0 : i32, i32
  }
  func.func @transform_6(%arg0: i32) -> (i32, i32) {
    %c0_i32 = arith.constant 0 : i32
    %c0_i32_0 = arith.constant 0 : i32
    %c0_i32_1 = arith.constant 0 : i32
    return %c0_i32, %c0_i32_0 : i32, i32
  }
  func.func @transform_7(%arg0: i32) -> (i32, i32) {
    %c0_i32 = arith.constant 0 : i32
    %c0_i32_0 = arith.constant 0 : i32
    %c0_i32_1 = arith.constant 0 : i32
    return %c0_i32, %c0_i32_0 : i32, i32
  }
  func.func @transform_8(%arg0: i32) -> (i32, i32) {
    %c0_i32 = arith.constant 0 : i32
    %c0_i32_0 = arith.constant 0 : i32
    %c0_i32_1 = arith.constant 0 : i32
    return %c0_i32, %c0_i32_0 : i32, i32
  }
  func.func @transform_9(%arg0: i32) -> (i32, i32) {
    %c0_i32 = arith.constant 0 : i32
    %c0_i32_0 = arith.constant 0 : i32
    %c0_i32_1 = arith.constant 0 : i32
    return %c0_i32, %c0_i32_0 : i32, i32
  }
  func.func @transform_10(%arg0: i32) -> (i32, i32) {
    %c0_i32 = arith.constant 0 : i32
    %c0_i32_0 = arith.constant 0 : i32
    %c0_i32_1 = arith.constant 0 : i32
    return %c0_i32, %c0_i32_0 : i32, i32
  }
  func.func @transform_11(%arg0: i32) -> (i32, i32) {
    %c0_i32 = arith.constant 0 : i32
    %c0_i32_0 = arith.constant 0 : i32
    %c0_i32_1 = arith.constant 0 : i32
    return %c0_i32, %c0_i32_0 : i32, i32
  }
  func.func @transform_12(%arg0: i32) -> (i32, i32) {
    %c0_i32 = arith.constant 0 : i32
    %c0_i32_0 = arith.constant 0 : i32
    %c0_i32_1 = arith.constant 0 : i32
    return %c0_i32, %c0_i32_0 : i32, i32
  }
  func.func @transform_13(%arg0: i32) -> (i32, i32) {
    %c0_i32 = arith.constant 0 : i32
    %c0_i32_0 = arith.constant 0 : i32
    %c0_i32_1 = arith.constant 0 : i32
    return %c0_i32, %c0_i32_0 : i32, i32
  }
  func.func @transform_14(%arg0: i32) -> (i32, i32) {
    %c0_i32 = arith.constant 0 : i32
    %c0_i32_0 = arith.constant 0 : i32
    %c0_i32_1 = arith.constant 0 : i32
    return %c0_i32, %c0_i32_0 : i32, i32
  }
}

</mosaic_0001>

<bundles_post_ra>
// kernel: block_forward.1
= control target key start
LH: loop header
LB: loop body
LE: loop exit
PB: predicated region body
PF: predicated region fallthrough
CT: control target
= control target key end

     0   :  { %vm58_vm0 = vcmask 261120   ;;  %s2340_s0 = inlined_call_operand.vmem [shape: f32[16,32], index: 0, kind: input, shape index: {}]   ;;  %s2341_s1 = inlined_call_operand.vmem [shape: f32[16,16], index: 1, kind: input, shape index: {}]   ;;  %s2342_s2 = inlined_call_operand.vmem [shape: f32[1,32], index: 2, kind: input, shape index: {}]   ;;  %s2343_s3 = inlined_call_operand.vmem [shape: f32[1,32], index: 3, kind: input, shape index: {}]   ;;  %s2344_s4 = inlined_call_operand.vmem [shape: f32[32,96], index: 4, kind: input, shape index: {}]   ;;  %s2345_s5 = inlined_call_operand.vmem [shape: f32[1,96], index: 5, kind: input, shape index: {}]   ;;  %s2346_s6 = inlined_call_operand.vmem [shape: f32[32,32], index: 6, kind: input, shape index: {}]   ;;  %s2347_s7 = inlined_call_operand.vmem [shape: f32[1,32], index: 7, kind: input, shape index: {}]   ;;  %s2348_s8 = inlined_call_operand.vmem [shape: f32[1,32], index: 8, kind: input, shape index: {}]   ;;  %s2349_s9 = inlined_call_operand.vmem [shape: f32[1,32], index: 9, kind: input, shape index: {}]   ;;  %s2350_s10 = inlined_call_operand.vmem [shape: f32[32,128], index: 10, kind: input, shape index: {}]   ;;  %s2351_s11 = inlined_call_operand.vmem [shape: f32[1,128], index: 11, kind: input, shape index: {}]   ;;  %s2352_s12 = inlined_call_operand.vmem [shape: f32[128,32], index: 12, kind: input, shape index: {}]   ;;  %s2353_s13 = inlined_call_operand.vmem [shape: f32[1,32], index: 13, kind: input, shape index: {}]   ;;  %s2354_s14 = inlined_call_operand.hbm [shape: f32[16,32], index: 14, kind: output, shape index: {}]  }
   0x1   :  { %v2078_v0 = vld [vmem:[%s2340_s0] sm:$0xff]  ;;  %v2083_v1 = vld [vmem:[%s2340_s0 + $0x8] sm:$0xff] }
   0x2   :  { %19 = vsyncpa [#allocation3], 0  ;;  %v59_v2 = vsel %vm58_vm0, %v2078_v0, 0.0  ;;  %v62_v3 = vsel %vm58_vm0, %v2083_v1, 0.0  ;;  %v105_v14 = vld [vmem:[%s2344_s4 + $0x18] sm:$0xff]  ;;  %v104_v15 = vld [vmem:[%s2344_s4 + $0x10] sm:$0xff] }
   0x3   :  { %60 = vadd.xlane.f32.xlu0 %v59_v2  ;;  %1767 = vmatprep.subr.mxu0 %v105_v14  ;;  %v103_v16 = vld [vmem:[%s2344_s4 + $0x8] sm:$0xff]  ;;  %v102_v17 = vld [vmem:[%s2344_s4] sm:$0xff]  ;;  %vm206_vm1 = vcmask 64512   ;;  %s1987_s29 = smov 120   ;;  %v1988_v49 = vmov 0.0   ;;  %vm292_vm4 = vcmask 130048  }
   0x4   :  { %1768 = vmatpush3.msra.mxu0 %v105_v14  ;;  %v1649_v25 = vld [vmem:[%s2342_s2] ss:$0 sm:$0xff]  ;;  %s1985_s2 = smov 88   ;;  %v51_v47 = vld [vmem:[%s2341_s1 + $0x8] sm:$0xff]  ;;  %s1990_s0 = smov 56  }
   0x5   :  { %1769 = vmatprep.subr.mxu0 %v104_v15  ;;  %v1650_v27 = vld [vmem:[%s2343_s3] ss:$0 sm:$0xff]  ;;  %s1986_s3 = smov 96   ;;  %vm53_vm2 = vcmp.eq.f32.partialorder %v51_v47, 0.0  ;;  %s1991_s17 = smov 80  }
   0x6   :  { %1770 = vmatpush3.msra.mxu0 %v104_v15  ;;  %v1651_v34 = vld [vmem:[%s2345_s5] ss:$0 sm:$0xff]  ;;  %v2152_v50 = vsel %vm53_vm2, -1e+30, %v1988_v49  ;;  %s1992_s18 = smov 112   ;;  %s1993_s19 = smov 72  }
   0x7   :  { %63 = vadd.xlane.f32.xlu0 %v62_v3  ;;  %1771 = vmatprep.subr.mxu0 %v103_v16  ;;  %v50_v48 = vld [vmem:[%s2341_s1] sm:$0xff]  ;;  %s1989_s1 = smov 64   ;;  %s1994_s20 = smov 104  }
   0x8   :  { %1772 = vmatpush3.msra.mxu0 %v103_v16  ;;  %vm52_vm3 = vcmp.eq.f32.partialorder %v50_v48, 0.0  ;;  %s1995_s25 = smov 48   ;;  %s1996_s26 = smov 40  }
   0x9   :  { %1773 = vmatprep.subr.mxu0 %v102_v17  ;;  %v2154_v52 = vsel %vm52_vm3, -1e+30, %v1988_v49 }
   0xa   :  { %1774 = vmatpush3.msra.mxu0 %v102_v17 }
  0x8c   :  { %v61_v4 = vpop.xlane.xlu0 %60 }
  0x8d   :  { %v66_v5 = vmul.f32 0.03125, %v61_v4 }
  0x8f   :  { %v68_v6 = vsub.f32 %v2078_v0, %v66_v5 }
  0x90   :  { %v64_v7 = vpop.xlane.xlu0 %63 }
  0x91   :  { %v67_v8 = vmul.f32 0.03125, %v64_v7  ;;  %v70_v9 = vmul.f32 %v68_v6, %v68_v6 }
  0x93   :  { %v69_v10 = vsub.f32 %v2083_v1, %v67_v8  ;;  %v72_v11 = vsel %vm58_vm0, %v70_v9, 0.0 }
  0x94   :  { %73 = vadd.xlane.f32.xlu1 %v72_v11 }
  0x95   :  { %v71_v12 = vmul.f32 %v69_v10, %v69_v10 }
  0x97   :  { %v75_v13 = vsel %vm58_vm0, %v71_v12, 0.0 }
  0x98   :  { %76 = vadd.xlane.f32.xlu1 %v75_v13 }
 0x11d   :  { %v74_v18 = vpop.xlane.xlu1 %73 }
 0x11e   :  { %v78_v19 = vmul.f32 0.03125, %v74_v18 }
 0x120   :  { %v80_v20 = vadd.f32 1e-06, %v78_v19 }
 0x121   :  { %v77_v21 = vpop.xlane.xlu1 %76 }
 0x122   :  { %1915 = vrsqrt.f32 %v80_v20  ;;  %v79_v22 = vmul.f32 0.03125, %v77_v21 }
 0x124   :  { %v81_v23 = vadd.f32 1e-06, %v79_v22 }
 0x126   :  { %1917 = vrsqrt.f32 %v81_v23 }
 0x12f   :  { %v1916_v24 = vpop.eup %1915 }
 0x130   :  { %v84_v26 = vmul.f32 %v1916_v24, %v68_v6 }
 0x132   :  { %v92_v28 = vmul.f32 %v1649_v25, %v84_v26 }
 0x133   :  { %v1918_v29 = vpop.eup %1917 }
 0x134   :  { %v85_v30 = vmul.f32 %v1918_v29, %v69_v10  ;;  %v100_v31 = vadd.f32 %v1650_v27, %v92_v28 }
 0x136   :  { %v93_v32 = vmul.f32 %v1649_v25, %v85_v30  ;;  %1775 = vmatprep.mubr.msk.f32.mxu0 %vm58_vm0, %v100_v31 }
 0x138   :  { %v101_v33 = vadd.f32 %v1650_v27, %v93_v32 }
 0x13a   :  { %1776 = vmatmul.mubr.msk.f32.vlgmr.msra.gmra.mxu0 %vm58_vm0, %v101_v33 }
 0x1fa   :  { %v1777_v35 = vpop.f32.mrf.mxu0 }
 0x1fb   :  { %v2116_v36 = vadd.f32 %v1777_v35, %v1651_v34 }
 0x1fc   :  { %v185_v37 = vpop.f32.mrf.mxu0 }
 0x1fd   :  { %v2118_v38 = vadd.f32 %v1651_v34, %v185_v37  ;;  %408 = vrot.lane.b32.xlu1 %v2116_v36, %s1985_s2  ;;  %204 = vrot.lane.b32.xlu0 %v2116_v36, %s1986_s3  ;;  %v2131_v40 = vmul.f32 0.35355338, %v2116_v36 }
 0x1ff   :  { %v2123_v39 = vmul.f32 0.35355338, %v2118_v38 }
 0x201   :  { %202 = vrot.lane.b32.xlu1 %v2118_v38, %s1986_s3  ;;  %402 = vrot.lane.b32.xlu0 %v2123_v39, %s1987_s29 }
 0x202   :  { %1782 = vmatprep.mubr.msk.f32.mxu0 %vm206_vm1, %v2123_v39 }
 0x205   :  { %406 = vrot.lane.b32.xlu1 %v2118_v38, %s1985_s2 }
 0x209   :  { %404 = vrot.lane.b32.xlu1 %v2131_v40, %s1987_s29 }
 0x26f   :  { %v409_v41 = vpop.permute.xlu1 %408  ;;  %v205_v42 = vpop.permute.xlu0 %204 }
 0x270   :  { %1778 = vmatprep.subr.msk.mxu0 %vm206_vm1, %v205_v42  ;;  %1792 = vmatprep.subr.msk.mxu1 %vm206_vm1, %v409_v41 }
 0x271   :  { %1779 = vmatpush3.xpose.msk.msra.mxu0 %vm206_vm1, %v205_v42  ;;  %1793 = vmatpush3.xpose.msk.msra.mxu1 %vm206_vm1, %v409_v41  ;;  %v196_v41 = vld [vmem:[%s2346_s6] sm:$0xff] }
 0x273   :  { %v203_v43 = vpop.permute.xlu1 %202  ;;  %v403_v44 = vpop.permute.xlu0 %402 }
 0x274   :  { %1780 = vmatprep.subr.msk.mxu0 %vm206_vm1, %v203_v43  ;;  %1796 = vmatprep.mubr.msk.f32.mxu1 %vm206_vm1, %v403_v44 }
 0x275   :  { %1781 = vmatpush3.xpose.msk.msra.mxu0 %vm206_vm1, %v203_v43 }
 0x277   :  { %v407_v45 = vpop.permute.xlu1 %406 }
 0x278   :  { %1783 = vmatmul.mubr.msk.f32.vlgmr.msra.gmra.mxu0 %vm206_vm1, %v2131_v40  ;;  %1794 = vmatprep.subr.msk.mxu1 %vm206_vm1, %v407_v45 }
 0x279   :  { %1795 = vmatpush3.xpose.msk.msra.mxu1 %vm206_vm1, %v407_v45 }
 0x27b   :  { %v405_v46 = vpop.permute.xlu1 %404 }
 0x27c   :  { %1797 = vmatmul.mubr.msk.f32.vlgmr.msra.gmra.mxu1 %vm206_vm1, %v405_v46 }
 0x338   :  { %v1784_v51 = vpop.f32.mrf.mxu0 }
 0x339   :  { %v289_v53 = vadd.f32 %v1784_v51, %v2152_v50 }
 0x33a   :  { %v283_v54 = vpop.f32.mrf.mxu0 }
 0x33b   :  { %v284_v55 = vadd.f32 %v283_v54, %v2154_v52  ;;  %v296_v56 = vsel %vm292_vm4, %v289_v53, -inf }
 0x33c   :  { %v1798_v57 = vpop.f32.mrf.mxu1  ;;  %297 = vmax.xlane.f32.xlu1 %v296_v56 }
 0x33d   :  { %v293_v58 = vsel %vm292_vm4, %v284_v55, -inf  ;;  %v490_v61 = vadd.f32 %v1798_v57, %v2152_v50 }
 0x33e   :  { %v484_v59 = vpop.f32.mrf.mxu1  ;;  %294 = vmax.xlane.f32.xlu0 %v293_v58 }
 0x33f   :  { %v485_v60 = vadd.f32 %v484_v59, %v2154_v52  ;;  %v496_v63 = vsel %vm292_vm4, %v490_v61, -inf }
 0x341   :  { %v493_v62 = vsel %vm292_vm4, %v485_v60, -inf }
 0x342   :  { %494 = vmax.xlane.f32.xlu0 %v493_v62 }
 0x346   :  { %497 = vmax.xlane.f32.xlu0 %v496_v63 }
 0x3c5   :  { %v298_v2 = vpop.xlane.xlu1 %297 }
 0x3c6   :  { %v300_v3 = vsub.f32 %v289_v53, %v298_v2 }
 0x3c7   :  { %v295_v4 = vpop.xlane.xlu0 %294 }
 0x3c8   :  { %v303_v5 = vmul.f32 1.442695, %v300_v3  ;;  %v299_v6 = vsub.f32 %v284_v55, %v295_v4 }
 0x3ca   :  { %1919 = vpow2.f32 %v303_v5  ;;  %v301_v7 = vmul.f32 1.442695, %v299_v6 }
 0x3cb   :  { %v495_v8 = vpop.xlane.xlu0 %494 }
 0x3cc   :  { %1921 = vpow2.f32 %v301_v7  ;;  %v499_v9 = vsub.f32 %v485_v60, %v495_v8 }
 0x3ce   :  { %v501_v10 = vmul.f32 1.442695, %v499_v9 }
 0x3cf   :  { %v498_v11 = vpop.xlane.xlu0 %497 }
 0x3d0   :  { %1923 = vpow2.f32 %v501_v10  ;;  %v500_v12 = vsub.f32 %v490_v61, %v498_v11 }
 0x3d2   :  { %v503_v13 = vmul.f32 1.442695, %v500_v12 }
 0x3d4   :  { %1925 = vpow2.f32 %v503_v13 }
 0x3d7   :  { %v1920_v14 = vpop.eup %1919 }
 0x3d8   :  { %v308_v15 = vsel %vm292_vm4, %v1920_v14, 0.0 }
 0x3d9   :  { %v1922_v16 = vpop.eup %1921  ;;  %309 = vadd.xlane.f32.xlu1 %v308_v15 }
 0x3da   :  { %v305_v17 = vsel %vm292_vm4, %v1922_v16, 0.0 }
 0x3db   :  { %306 = vadd.xlane.f32.xlu0 %v305_v17 }
 0x3dd   :  { %v1924_v18 = vpop.eup %1923 }
 0x3de   :  { %v505_v19 = vsel %vm292_vm4, %v1924_v18, 0.0 }
 0x3df   :  { %506 = vadd.xlane.f32.xlu0 %v505_v19 }
 0x3e1   :  { %v1926_v20 = vpop.eup %1925 }
 0x3e2   :  { %v508_v21 = vsel %vm292_vm4, %v1926_v20, 0.0 }
 0x3e3   :  { %509 = vadd.xlane.f32.xlu1 %v508_v21 }
 0x3f4   :  { %315 = vrot.lane.b32.xlu1 %v2118_v38, %s1989_s1 }
 0x3f5   :  { %317 = vrot.lane.b32.xlu0 %v2116_v36, %s1989_s1 }
 0x3f8   :  { %517 = vrot.lane.b32.xlu1 %v2116_v36, %s1990_s0 }
 0x3f9   :  { %770 = vrot.lane.b32.xlu0 %v2116_v36, %s1991_s17 }
 0x3fc   :  { %515 = vrot.lane.b32.xlu1 %v2118_v38, %s1990_s0 }
 0x3fd   :  { %764 = vrot.lane.b32.xlu0 %v2123_v39, %s1992_s18 }
 0x400   :  { %768 = vrot.lane.b32.xlu1 %v2118_v38, %s1991_s17 }
 0x401   :  { %1053 = vrot.lane.b32.xlu0 %v2116_v36, %s1993_s19 }
 0x404   :  { %766 = vrot.lane.b32.xlu1 %v2131_v40, %s1992_s18 }
 0x405   :  { %1047 = vrot.lane.b32.xlu0 %v2123_v39, %s1994_s20 }
 0x408   :  { %1051 = vrot.lane.b32.xlu1 %v2118_v38, %s1993_s19 }
 0x40c   :  { %1049 = vrot.lane.b32.xlu1 %v2131_v40, %s1994_s20  ;;  %v197_v40 = vld [vmem:[%s2346_s6 + $0x8] sm:$0xff] }
 0x462   :  { %v310_v22 = vpop.xlane.xlu1 %309 }
 0x463   :  { %1927 = vrcp.f32 %v310_v22 }
 0x464   :  { %v307_v23 = vpop.xlane.xlu0 %306 }
 0x465   :  { %1929 = vrcp.f32 %v307_v23 }
 0x468   :  { %v507_v24 = vpop.xlane.xlu0 %506 }
 0x469   :  { %1931 = vrcp.f32 %v507_v24 }
 0x46c   :  { %v510_v25 = vpop.xlane.xlu1 %509  ;;  %v318_v26 = vpop.permute.xlu0 %317 }
 0x46d   :  { %1933 = vrcp.f32 %v510_v25  ;;  %1785 = vmatprep.subr.mxu0 %v318_v26 }
 0x46e   :  { %1786 = vmatpush3.msra.mxu0 %v318_v26 }
 0x470   :  { %v316_v27 = vpop.permute.xlu1 %315  ;;  %v1928_v28 = vpop.eup %1927 }
 0x471   :  { %1787 = vmatprep.subr.mxu0 %v316_v27  ;;  %v314_v32 = vmul.f32 %v1928_v28, %v1920_v14  ;;  %v771_v43 = vpop.permute.xlu0 %770 }
 0x472   :  { %v1930_v29 = vpop.eup %1929  ;;  %1788 = vmatpush3.msra.mxu0 %v316_v27 }
 0x473   :  { %v312_v30 = vmul.f32 %v1930_v29, %v1922_v16 }
 0x474   :  { %v518_v31 = vpop.permute.xlu1 %517 }
 0x475   :  { %1789 = vmatprep.mubr.msk.f32.mxu0 %vm292_vm4, %v312_v30  ;;  %1799 = vmatprep.subr.mxu0 %v518_v31  ;;  %v765_v47 = vpop.permute.xlu0 %764 }
 0x476   :  { %v1932_v33 = vpop.eup %1931  ;;  %1790 = vmatmul.mubr.msk.f32.vlgmr.msra.gmra.mxu0 %vm292_vm4, %v314_v32 }
 0x477   :  { %1800 = vmatpush3.msra.mxu0 %v518_v31  ;;  %v512_v34 = vmul.f32 %v1932_v33, %v1924_v18 }
 0x478   :  { %v516_v35 = vpop.permute.xlu1 %515 }
 0x479   :  { %1801 = vmatprep.subr.mxu0 %v516_v35  ;;  %1803 = vmatprep.mubr.msk.f32.mxu0 %vm292_vm4, %v512_v34  ;;  %v1054_v49 = vpop.permute.xlu0 %1053 }
 0x47a   :  { %v1934_v37 = vpop.eup %1933  ;;  %1802 = vmatpush3.msra.mxu0 %v516_v35 }
 0x47b   :  { %v514_v39 = vmul.f32 %v1934_v37, %v1926_v20  ;;  %1806 = vmatprep.subr.mxu0 %v197_v40 }
 0x47c   :  { %v769_v48 = vpop.permute.xlu1 %768 }
 0x47d   :  { %1804 = vmatmul.mubr.msk.f32.vlgmr.msra.gmra.mxu0 %vm292_vm4, %v514_v39  ;;  %v1048_v53 = vpop.permute.xlu0 %1047 }
 0x47e   :  { %1807 = vmatpush3.msra.mxu0 %v197_v40 }
 0x47f   :  { %1811 = vmatprep.subr.mxu0 %v196_v41 }
 0x480   :  { %v767_v51 = vpop.permute.xlu1 %766 }
 0x484   :  { %v1052_v54 = vpop.permute.xlu1 %1051 }
 0x488   :  { %v1050_v55 = vpop.permute.xlu1 %1049 }
 0x536   :  { %v1791_v42 = vpop.f32.mrf.mxu0 }
 0x538   :  { %v393_v44 = vpop.f32.mrf.mxu0 }
 0x53d   :  { %v1805_v45 = vpop.f32.mrf.mxu0 }
 0x53f   :  { %v593_v46 = vpop.f32.mrf.mxu0 }
 0x540   :  { %1808 = vmatprep.mubr.msk.f32.mxu0 %vm206_vm1, %v593_v46 }
 0x541   :  { %1809 = vmatmul.mubr.msk.f32.vlgmr.msra.gmra.mxu0 %vm206_vm1, %v1805_v45 }
 0x542   :  { %1812 = vmatpush3.msra.mxu0 %v196_v41  ;;  %1813 = vmatprep.mubr.msk.f32.mxu0 %vm206_vm1, %v393_v44 }
 0x543   :  { %1816 = vmatprep.subr.msk.mxu0 %vm206_vm1, %v771_v43 }
 0x545   :  { %1814 = vmatmul.mubr.msk.f32.vlgmr.msra.gmra.mxu0 %vm206_vm1, %v1791_v42 }
 0x546   :  { %1817 = vmatpush3.xpose.msk.msra.mxu0 %vm206_vm1, %v771_v43  ;;  %1820 = vmatprep.mubr.msk.f32.mxu0 %vm206_vm1, %v765_v47 }
 0x547   :  { %1818 = vmatprep.subr.msk.mxu0 %vm206_vm1, %v769_v48 }
 0x54a   :  { %1819 = vmatpush3.xpose.msk.msra.mxu0 %vm206_vm1, %v769_v48 }
 0x54b   :  { %1835 = vmatprep.subr.msk.mxu0 %vm206_vm1, %v1054_v49 }
 0x54d   :  { %1821 = vmatmul.mubr.msk.f32.vlgmr.msra.gmra.mxu0 %vm206_vm1, %v767_v51 }
 0x54e   :  { %1836 = vmatpush3.xpose.msk.msra.mxu0 %vm206_vm1, %v1054_v49  ;;  %1839 = vmatprep.mubr.msk.f32.mxu0 %vm206_vm1, %v1048_v53 }
 0x54f   :  { %1837 = vmatprep.subr.msk.mxu0 %vm206_vm1, %v1052_v54 }
 0x552   :  { %1838 = vmatpush3.xpose.msk.msra.mxu0 %vm206_vm1, %v1052_v54 }
 0x555   :  { %1840 = vmatmul.mubr.msk.f32.vlgmr.msra.gmra.mxu0 %vm206_vm1, %v1050_v55 }
 0x601   :  { %v1810_v56 = vpop.f32.mrf.mxu0 }
 0x603   :  { %v674_v57 = vpop.f32.mrf.mxu0 }
 0x605   :  { %v1815_v58 = vpop.f32.mrf.mxu0 }
 0x606   :  { %v2206_v59 = vadd.f32 %v1815_v58, %v1810_v56 }
 0x607   :  { %v755_v60 = vpop.f32.mrf.mxu0 }
 0x608   :  { %v2208_v61 = vadd.f32 %v755_v60, %v674_v57 }
 0x60d   :  { %v1822_v62 = vpop.f32.mrf.mxu0 }
 0x60e   :  { %v852_v63 = vadd.f32 %v1822_v62, %v2152_v50  ;;  %v1686_v62 = vld [vmem:[%s2347_s7] ss:$0 sm:$0xff] }
 0x60f   :  { %v846_v2 = vpop.f32.mrf.mxu0 }
 0x610   :  { %v847_v3 = vadd.f32 %v846_v2, %v2154_v52  ;;  %v858_v4 = vsel %vm292_vm4, %v852_v63, -inf }
 0x611   :  { %859 = vmax.xlane.f32.xlu1 %v858_v4 }
 0x612   :  { %v855_v5 = vsel %vm292_vm4, %v847_v3, -inf }
 0x613   :  { %856 = vmax.xlane.f32.xlu0 %v855_v5 }
 0x615   :  { %v1841_v6 = vpop.f32.mrf.mxu0 }
 0x616   :  { %v1135_v23 = vadd.f32 %v1841_v6, %v2152_v50  ;;  %v198_v50 = vld [vmem:[%s2346_s6 + $0x10] sm:$0xff] }
 0x617   :  { %v1129_v7 = vpop.f32.mrf.mxu0 }
 0x618   :  { %v1130_v8 = vadd.f32 %v1129_v7, %v2154_v52  ;;  %v1141_v24 = vsel %vm292_vm4, %v1135_v23, -inf }
 0x61a   :  { %v1138_v9 = vsel %vm292_vm4, %v1130_v8, -inf }
 0x622   :  { %877 = vrot.lane.b32.xlu1 %v2118_v38, %s1995_s25 }
 0x646   :  { %1139 = vmax.xlane.f32.xlu1 %v1138_v9 }
 0x69a   :  { %v860_v10 = vpop.xlane.xlu1 %859 }
 0x69b   :  { %v862_v11 = vsub.f32 %v852_v63, %v860_v10 }
 0x69c   :  { %v857_v12 = vpop.xlane.xlu0 %856 }
 0x69d   :  { %v865_v13 = vmul.f32 1.442695, %v862_v11  ;;  %v861_v14 = vsub.f32 %v847_v3, %v857_v12 }
 0x69e   :  { %v878_v52 = vpop.permute.xlu1 %877 }
 0x69f   :  { %1935 = vpow2.f32 %v865_v13  ;;  %v863_v15 = vmul.f32 1.442695, %v861_v14 }
 0x6a1   :  { %1937 = vpow2.f32 %v863_v15  ;;  %v1388_v15 = vld [vmem:[%s2350_s10 + $0x18] sm:$0xff] }
 0x6a2   :  { %1854 = vmatprep.subr.mxu0 %v1388_v15 }
 0x6a3   :  { %1855 = vmatpush3.msra.mxu0 %v1388_v15 }
 0x6ac   :  { %v1936_v16 = vpop.eup %1935 }
 0x6ad   :  { %v870_v17 = vsel %vm292_vm4, %v1936_v16, 0.0 }
 0x6ae   :  { %v1938_v18 = vpop.eup %1937  ;;  %871 = vadd.xlane.f32.xlu0 %v870_v17  ;;  %v1386_v17 = vld [vmem:[%s2350_s10 + $0x8] sm:$0xff] }
 0x6af   :  { %v867_v19 = vsel %vm292_vm4, %v1938_v18, 0.0 }
 0x6b2   :  { %868 = vadd.xlane.f32.xlu0 %v867_v19 }
 0x6c8   :  { %879 = vrot.lane.b32.xlu0 %v2116_v36, %s1995_s25  ;;  %s1997_s25 = smov [#allocation2]  }
 0x6cf   :  { %v1140_v20 = vpop.xlane.xlu1 %1139 }
 0x6d0   :  { %v1144_v21 = vsub.f32 %v1130_v8, %v1140_v20 }
 0x6d2   :  { %v1146_v22 = vmul.f32 1.442695, %v1144_v21 }
 0x6d4   :  { %1939 = vpow2.f32 %v1146_v22 }
 0x6e1   :  { %v1940_v25 = vpop.eup %1939 }
 0x6e2   :  { %v1150_v26 = vsel %vm292_vm4, %v1940_v25, 0.0 }
 0x6e7   :  { %1142 = vmax.xlane.f32.xlu0 %v1141_v24 }
 0x6eb   :  { %1151 = vadd.xlane.f32.xlu0 %v1150_v26 }
 0x701   :  { %1162 = vrot.lane.b32.xlu0 %v2116_v36, %s1996_s26 }
 0x737   :  { %v872_v27 = vpop.xlane.xlu0 %871 }
 0x738   :  { %1941 = vrcp.f32 %v872_v27 }
 0x73b   :  { %v869_v28 = vpop.xlane.xlu0 %868 }
 0x73c   :  { %1943 = vrcp.f32 %v869_v28 }
 0x73f   :  { %v880_v29 = vpop.permute.xlu0 %879 }
 0x740   :  { %1823 = vmatprep.subr.mxu1 %v880_v29 }
 0x741   :  { %1824 = vmatpush3.msra.mxu1 %v880_v29 }
 0x742   :  { %1825 = vmatprep.subr.mxu1 %v878_v52 }
 0x743   :  { %1826 = vmatpush3.msra.mxu1 %v878_v52 }
 0x744   :  { %1830 = vmatprep.subr.mxu1 %v198_v50 }
 0x745   :  { %v1942_v30 = vpop.eup %1941 }
 0x746   :  { %v876_v33 = vmul.f32 %v1942_v30, %v1936_v16  ;;  %v1387_v16 = vld [vmem:[%s2350_s10 + $0x10] sm:$0xff] }
 0x747   :  { %1856 = vmatprep.subr.mxu0 %v1387_v16 }
 0x748   :  { %1857 = vmatpush3.msra.mxu0 %v1387_v16 }
 0x749   :  { %v1944_v31 = vpop.eup %1943  ;;  %1858 = vmatprep.subr.mxu0 %v1386_v17 }
 0x74a   :  { %v874_v32 = vmul.f32 %v1944_v31, %v1938_v18  ;;  %v1385_v18 = vld [vmem:[%s2350_s10] sm:$0xff]  ;;  %1859 = vmatpush3.msra.mxu0 %v1386_v17 }
 0x74b   :  { %1860 = vmatprep.subr.mxu0 %v1385_v18 }
 0x74c   :  { %1827 = vmatprep.mubr.msk.f32.mxu1 %vm292_vm4, %v874_v32  ;;  %1861 = vmatpush3.msra.mxu0 %v1385_v18 }
 0x74d   :  { %1828 = vmatmul.mubr.msk.f32.vlgmr.msra.gmra.mxu1 %vm292_vm4, %v876_v33  ;;  %v1546_v33 = vld [vmem:[%s2352_s12 + $0x78] sm:$0xff] }
 0x74e   :  { %1831 = vmatpush3.msra.mxu1 %v198_v50  ;;  %v1688_v50 = vld [vmem:[%s2349_s9] ss:$0 sm:$0xff] }
 0x770   :  { %v1143_v36 = vpop.xlane.xlu0 %1142 }
 0x771   :  { %v1145_v34 = vsub.f32 %v1135_v23, %v1143_v36  ;;  %v1545_v36 = vld [vmem:[%s2352_s12 + $0x70] sm:$0xff] }
 0x773   :  { %v1148_v35 = vmul.f32 1.442695, %v1145_v34  ;;  %v1544_v34 = vld [vmem:[%s2352_s12 + $0x68] sm:$0xff] }
 0x774   :  { %v1152_v37 = vpop.xlane.xlu0 %1151 }
 0x775   :  { %1945 = vpow2.f32 %v1148_v35  ;;  %v1543_v35 = vld [vmem:[%s2352_s12 + $0x60] sm:$0xff] }
 0x776   :  { %1947 = vrcp.f32 %v1152_v37  ;;  %v1542_v37 = vld [vmem:[%s2352_s12 + $0x58] sm:$0xff] }
 0x778   :  { %v1163_v39 = vpop.permute.xlu0 %1162 }
 0x779   :  { %1842 = vmatprep.subr.mxu1 %v1163_v39 }
 0x782   :  { %v1946_v40 = vpop.eup %1945 }
 0x783   :  { %v1153_v41 = vsel %vm292_vm4, %v1946_v40, 0.0  ;;  %v1948_v42 = vpop.eup %1947 }
 0x784   :  { %1154 = vadd.xlane.f32.xlu1 %v1153_v41  ;;  %v1157_v46 = vmul.f32 %v1948_v42, %v1940_v25  ;;  %v1687_v25 = vld [vmem:[%s2348_s8] ss:$0 sm:$0xff]  ;;  %v1538_v42 = vld [vmem:[%s2352_s12 + $0x38] sm:$0xff] }
 0x785   :  { %v1539_v41 = vld [vmem:[%s2352_s12 + $0x40] sm:$0xff] }
 0x795   :  { %1160 = vrot.lane.b32.xlu1 %v2118_v38, %s1996_s26  ;;  %v199_v38 = vld [vmem:[%s2346_s6 + $0x18] sm:$0xff]  ;;  %s1638_s26 = sshll.u32 %s1997_s25, 4  ;;  %s1639_s26 = int_to_ptr.vmem [resolvable:$true] %s1638_s26 }
 0x796   :  { %s1963_s27 = scalar_lea.vmem %s1639_s26, 256  ;;  %p1968_p1 = scmp.lt.s32.totalorder %s1639_s26, %s1639_s26 }
 0x797   :  { %p1964_p0 = scmp.ne.s32.totalorder %s1639_s26, %s1963_s27  ;;  %p1969_p2 = scmp.lt.s32.totalorder %s1963_s27, %s1963_s27 }
 0x799   :  { %p1970_p3 = por %p1969_p2, %p1968_p1 }
 0x79b   :  { %p1971_p4 = pnand %p1970_p3, %p1964_p0 }
 0x80d   :  { %v1829_v43 = vpop.f32.mrf.mxu1  ;;  %v1155_v44 = vpop.xlane.xlu1 %1154 }
 0x80e   :  { %1949 = vrcp.f32 %v1155_v44  ;;  %v1536_v44 = vld [vmem:[%s2352_s12 + $0x28] sm:$0xff] }
 0x80f   :  { %v955_v45 = vpop.f32.mrf.mxu1 }
 0x810   :  { %1832 = vmatprep.mubr.msk.f32.mxu1 %vm206_vm1, %v955_v45  ;;  %v1535_v45 = vld [vmem:[%s2352_s12 + $0x20] sm:$0xff] }
 0x811   :  { %1833 = vmatmul.mubr.msk.f32.vlgmr.msra.gmra.mxu1 %vm206_vm1, %v1829_v43  ;;  %v1161_v47 = vpop.permute.xlu1 %1160  ;;  %v1537_v43 = vld [vmem:[%s2352_s12 + $0x30] sm:$0xff] }
 0x812   :  { %1843 = vmatpush3.msra.mxu1 %v1163_v39  ;;  %1846 = vmatprep.mubr.msk.f32.mxu1 %vm292_vm4, %v1157_v46  ;;  %v1541_v39 = vld [vmem:[%s2352_s12 + $0x50] sm:$0xff]  ;;  %v1534_v46 = vld [vmem:[%s2352_s12 + $0x18] sm:$0xff] }
 0x813   :  { %1844 = vmatprep.subr.mxu1 %v1161_v47 }
 0x814   :  { %1845 = vmatpush3.msra.mxu1 %v1161_v47  ;;  %v1533_v47 = vld [vmem:[%s2352_s12 + $0x10] sm:$0xff] }
 0x815   :  { %1849 = vmatprep.subr.mxu1 %v199_v38 }
 0x81b   :  { %v1950_v48 = vpop.eup %1949 }
 0x81c   :  { %v1159_v49 = vmul.f32 %v1950_v48, %v1946_v40  ;;  %v1540_v40 = vld [vmem:[%s2352_s12 + $0x48] sm:$0xff] }
 0x81d   :  { %v1532_v48 = vld [vmem:[%s2352_s12 + $0x8] sm:$0xff] }
 0x81e   :  { %1847 = vmatmul.mubr.msk.f32.vlgmr.msra.gmra.mxu1 %vm292_vm4, %v1159_v49  ;;  %v1531_v49 = vld [vmem:[%s2352_s12] sm:$0xff] }
 0x81f   :  { %1850 = vmatpush3.msra.mxu1 %v199_v38  ;;  %v1689_v38 = vld [vmem:[%s2351_s11] ss:$0 sm:$0xff] }
 0x820   :  { %1865 = vmatprep.subr.mxu1 %v1546_v33 }
 0x8d1   :  { %v1834_v51 = vpop.f32.mrf.mxu1 }
 0x8d2   :  { %v1046_v53 = vadd.f32 %v1834_v51, %v2206_v59 }
 0x8d3   :  { %v1036_v54 = vpop.f32.mrf.mxu1 }
 0x8d4   :  { %v1045_v55 = vadd.f32 %v1036_v54, %v2208_v61 }
 0x8de   :  { %v1848_v56 = vpop.f32.mrf.mxu1 }
 0x8e0   :  { %v1238_v57 = vpop.f32.mrf.mxu1 }
 0x8e1   :  { %1851 = vmatprep.mubr.msk.f32.mxu1 %vm206_vm1, %v1238_v57 }
 0x8e2   :  { %1852 = vmatmul.mubr.msk.f32.vlgmr.msra.gmra.mxu1 %vm206_vm1, %v1848_v56 }
 0x8e3   :  { %1866 = vmatpush3.msra.mxu1 %v1546_v33 }
 0x8e4   :  { %1867 = vmatprep.subr.mxu1 %v1545_v36 }
 0x8e5   :  { %1868 = vmatpush3.msra.mxu1 %v1545_v36 }
 0x8e6   :  { %1869 = vmatprep.subr.mxu1 %v1544_v34 }
 0x8e7   :  { %1870 = vmatpush3.msra.mxu1 %v1544_v34 }
 0x8e8   :  { %1871 = vmatprep.subr.mxu1 %v1543_v35 }
 0x8e9   :  { %1872 = vmatpush3.msra.mxu1 %v1543_v35 }
 0x8ea   :  { %1873 = vmatprep.subr.mxu1 %v1542_v37 }
 0x8eb   :  { %1874 = vmatpush3.msra.mxu1 %v1542_v37 }
 0x8ec   :  { %1875 = vmatprep.subr.mxu1 %v1541_v39 }
 0x8ed   :  { %1876 = vmatpush3.msra.mxu1 %v1541_v39 }
 0x8ee   :  { %1877 = vmatprep.subr.mxu1 %v1540_v40 }
 0x8ef   :  { %1878 = vmatpush3.msra.mxu1 %v1540_v40 }
 0x8f0   :  { %1879 = vmatprep.subr.mxu1 %v1539_v41 }
 0x8f1   :  { %1880 = vmatpush3.msra.mxu1 %v1539_v41 }
 0x8f2   :  { %1881 = vmatprep.subr.mxu1 %v1538_v42 }
 0x8f3   :  { %1882 = vmatpush3.msra.mxu1 %v1538_v42 }
 0x8f4   :  { %1883 = vmatprep.subr.mxu1 %v1537_v43 }
 0x8f5   :  { %1884 = vmatpush3.msra.mxu1 %v1537_v43  ;;  %v1692_v43 = vld [vmem:[%s2353_s13] ss:$0 sm:$0xff] }
 0x8f6   :  { %1885 = vmatprep.subr.mxu1 %v1536_v44 }
 0x8f7   :  { %1886 = vmatpush3.msra.mxu1 %v1536_v44 }
 0x8f8   :  { %1887 = vmatprep.subr.mxu1 %v1535_v45 }
 0x8f9   :  { %1888 = vmatpush3.msra.mxu1 %v1535_v45 }
 0x8fa   :  { %1889 = vmatprep.subr.mxu1 %v1534_v46 }
 0x8fb   :  { %1890 = vmatpush3.msra.mxu1 %v1534_v46 }
 0x8fc   :  { %1891 = vmatprep.subr.mxu1 %v1533_v47 }
 0x8fd   :  { %1892 = vmatpush3.msra.mxu1 %v1533_v47 }
 0x8fe   :  { %1893 = vmatprep.subr.mxu1 %v1532_v48 }
 0x8ff   :  { %1894 = vmatpush3.msra.mxu1 %v1532_v48 }
 0x900   :  { %1895 = vmatprep.subr.mxu1 %v1531_v49 }
 0x901   :  { %1896 = vmatpush3.msra.mxu1 %v1531_v49 }
 0x9a2   :  { %v1853_v58 = vpop.f32.mrf.mxu1 }
 0x9a3   :  { %v1329_v60 = vadd.f32 %v1853_v58, %v1046_v53 }
 0x9a4   :  { %v1319_v63 = vpop.f32.mrf.mxu1 }
 0x9a5   :  { %v1331_v2 = vadd.f32 %v1329_v60, %v2083_v1  ;;  %v1328_v3 = vadd.f32 %v1319_v63, %v1045_v55 }
 0x9a7   :  { %v2246_v59 = vadd.f32 %v1686_v62, %v1331_v2  ;;  %v1330_v61 = vadd.f32 %v1328_v3, %v2078_v0 }
 0x9a9   :  { %v2249_v4 = vadd.f32 %v1686_v62, %v1330_v61  ;;  %v1346_v5 = vsel %vm58_vm0, %v2246_v59, 0.0 }
 0x9aa   :  { %1347 = vadd.xlane.f32.xlu0 %v1346_v5 }
 0x9ab   :  { %v1343_v6 = vsel %vm58_vm0, %v2249_v4, 0.0 }
 0x9ac   :  { %1344 = vadd.xlane.f32.xlu1 %v1343_v6 }
 0xa33   :  { %v1348_v7 = vpop.xlane.xlu0 %1347 }
 0xa34   :  { %v1350_v8 = vmul.f32 0.03125, %v1348_v7 }
 0xa35   :  { %v1345_v9 = vpop.xlane.xlu1 %1344 }
 0xa36   :  { %v1352_v1 = vsub.f32 %v2246_v59, %v1350_v8  ;;  %v1349_v10 = vmul.f32 0.03125, %v1345_v9 }
 0xa38   :  { %v1351_v11 = vsub.f32 %v2249_v4, %v1349_v10  ;;  %v1354_v12 = vmul.f32 %v1352_v1, %v1352_v1 }
 0xa3a   :  { %v1358_v0 = vsel %vm58_vm0, %v1354_v12, 0.0  ;;  %v1353_v13 = vmul.f32 %v1351_v11, %v1351_v11 }
 0xa3b   :  { %1359 = vadd.xlane.f32.xlu1 %v1358_v0 }
 0xa3c   :  { %v1355_v14 = vsel %vm58_vm0, %v1353_v13, 0.0 }
 0xa3d   :  { %1356 = vadd.xlane.f32.xlu0 %v1355_v14 }
 0xac4   :  { %v1360_v19 = vpop.xlane.xlu1 %1359 }
 0xac5   :  { %v1362_v52 = vmul.f32 0.03125, %v1360_v19 }
 0xac6   :  { %v1357_v20 = vpop.xlane.xlu0 %1356 }
 0xac7   :  { %v1364_v21 = vadd.f32 1e-06, %v1362_v52  ;;  %v1361_v22 = vmul.f32 0.03125, %v1357_v20 }
 0xac9   :  { %1951 = vrsqrt.f32 %v1364_v21  ;;  %v1363_v23 = vadd.f32 1e-06, %v1361_v22 }
 0xacb   :  { %1953 = vrsqrt.f32 %v1363_v23 }
 0xad6   :  { %v1952_v24 = vpop.eup %1951 }
 0xad7   :  { %v1368_v26 = vmul.f32 %v1952_v24, %v1352_v1 }
 0xad8   :  { %v1954_v27 = vpop.eup %1953 }
 0xad9   :  { %v1367_v28 = vmul.f32 %v1954_v27, %v1351_v11  ;;  %v1376_v29 = vmul.f32 %v1687_v25, %v1368_v26 }
 0xadb   :  { %v1375_v30 = vmul.f32 %v1687_v25, %v1367_v28  ;;  %v1384_v32 = vadd.f32 %v1688_v50, %v1376_v29 }
 0xadd   :  { %v1383_v31 = vadd.f32 %v1688_v50, %v1375_v30 }
 0xadf   :  { %1862 = vmatprep.mubr.msk.f32.mxu0 %vm58_vm0, %v1383_v31 }
 0xae0   :  { %1863 = vmatmul.mubr.msk.f32.vlgmr.msra.gmra.mxu0 %vm58_vm0, %v1384_v32 }
 0xba0   :  { %v1864_v51 = vpop.f32.mrf.mxu0 }
 0xba1   :  { %v1474_v53 = vadd.f32 %v1864_v51, %v1689_v38 }
 0xba2   :  { %v1468_v54 = vpop.f32.mrf.mxu0 }
 0xba3   :  { %v1480_v55 = vmul.f32 0.70710677, %v1474_v53  ;;  %v1469_v56 = vadd.f32 %v1689_v38, %v1468_v54  ;;  %v1478_v40 = vmul.f32 0.5, %v1474_v53 }
 0xba5   :  { %v1482_v57 = vand.u32 2147483647, %v1480_v55  ;;  %v1479_v58 = vmul.f32 0.70710677, %v1469_v56  ;;  %vm1522_vm5 = vcmp.ge.f32.partialorder %v1480_v55, 0.0  ;;  %v1477_v37 = vmul.f32 0.5, %v1469_v56 }
 0xba7   :  { %v1484_v60 = vmul.f32 0.3275911, %v1482_v57  ;;  %v1481_v62 = vand.u32 2147483647, %v1479_v58  ;;  %v1510_v61 = vsub.f32 0.0, %v1482_v57  ;;  %vm1521_vm6 = vcmp.ge.f32.partialorder %v1479_v58, 0.0 }
 0xba9   :  { %v1486_v63 = vadd.f32 1.0, %v1484_v60  ;;  %v1483_v2 = vmul.f32 0.3275911, %v1481_v62  ;;  %v1509_v5 = vsub.f32 0.0, %v1481_v62  ;;  %v1512_v6 = vmul.f32 %v1510_v61, %v1482_v57 }
 0xbab   :  { %1955 = vrcp.f32 %v1486_v63  ;;  %v1485_v3 = vadd.f32 1.0, %v1483_v2  ;;  %v1511_v8 = vmul.f32 %v1509_v5, %v1481_v62  ;;  %v1515_v1 = vmul.f32 1.442695, %v1512_v6 }
 0xbad   :  { %1957 = vrcp.f32 %v1485_v3  ;;  %v1513_v12 = vmul.f32 1.442695, %v1511_v8 }
 0xbae   :  { %1959 = vpow2.f32 %v1515_v1 }
 0xbaf   :  { %1961 = vpow2.f32 %v1513_v12 }
 0xbb8   :  { %v1956_v7 = vpop.eup %1955 }
 0xbb9   :  { %v1492_v9 = vmul.f32 1.0614054, %v1956_v7 }
 0xbba   :  { %v1958_v10 = vpop.eup %1957 }
 0xbbb   :  { %v1494_v11 = vadd.f32 -1.4531521, %v1492_v9  ;;  %v1491_v0 = vmul.f32 1.0614054, %v1958_v10  ;;  %v1960_v25 = vpop.eup %1959 }
 0xbbc   :  { %v1962_v29 = vpop.eup %1961 }
 0xbbd   :  { %v1496_v13 = vmul.f32 %v1956_v7, %v1494_v11  ;;  %v1493_v14 = vadd.f32 -1.4531521, %v1491_v0 }
 0xbbf   :  { %v1498_v15 = vadd.f32 1.4214138, %v1496_v13  ;;  %v1495_v16 = vmul.f32 %v1958_v10, %v1493_v14 }
 0xbc1   :  { %v1500_v17 = vmul.f32 %v1956_v7, %v1498_v15  ;;  %v1497_v18 = vadd.f32 1.4214138, %v1495_v16 }
 0xbc3   :  { %v1502_v19 = vadd.f32 -0.28449672, %v1500_v17  ;;  %v1499_v52 = vmul.f32 %v1958_v10, %v1497_v18 }
 0xbc5   :  { %v1504_v20 = vmul.f32 %v1956_v7, %v1502_v19  ;;  %v1501_v21 = vadd.f32 -0.28449672, %v1499_v52 }
 0xbc7   :  { %v1506_v22 = vadd.f32 0.2548296, %v1504_v20  ;;  %v1503_v23 = vmul.f32 %v1958_v10, %v1501_v21 }
 0xbc9   :  { %v1508_v24 = vmul.f32 %v1956_v7, %v1506_v22  ;;  %v1505_v26 = vadd.f32 0.2548296, %v1503_v23 }
 0xbcb   :  { %v1518_v27 = vmul.f32 %v1960_v25, %v1508_v24  ;;  %v1507_v28 = vmul.f32 %v1958_v10, %v1505_v26 }
 0xbcd   :  { %v1520_v50 = vsub.f32 1.0, %v1518_v27  ;;  %v1517_v30 = vmul.f32 %v1962_v29, %v1507_v28 }
 0xbcf   :  { %v1524_v31 = vsub.f32 0.0, %v1520_v50  ;;  %v1519_v32 = vsub.f32 1.0, %v1517_v30 }
 0xbd1   :  { %v1526_v33 = vsel %vm1522_vm5, %v1520_v50, %v1524_v31  ;;  %v1523_v36 = vsub.f32 0.0, %v1519_v32 }
 0xbd2   :  { %v1528_v34 = vadd.f32 1.0, %v1526_v33 }
 0xbd3   :  { %v1525_v35 = vsel %vm1521_vm6, %v1519_v32, %v1523_v36 }
 0xbd4   :  { %v1527_v39 = vadd.f32 1.0, %v1525_v35  ;;  %v1530_v42 = vmul.f32 %v1528_v34, %v1478_v40 }
 0xbd6   :  { %v1529_v41 = vmul.f32 %v1527_v39, %v1477_v37 }
 0xbd8   :  { %1897 = vmatprep.mubr.f32.mxu1 %v1529_v41 }
 0xbd9   :  { %1898 = vmatmul.mubr.f32.vlgmr.msra.gmra.mxu1 %v1530_v42 }
 0xc99   :  { %v1899_v44 = vpop.f32.mrf.mxu1 }
 0xc9a   :  { %v1626_v45 = vadd.f32 %v1899_v44, %v1692_v43 }
 0xc9b   :  { %v1620_v46 = vpop.f32.mrf.mxu1 }
 0xc9c   :  { %v1630_v47 = vadd.f32 %v1626_v45, %v2246_v59  ;;  %v1621_v48 = vadd.f32 %v1692_v43, %v1620_v46 }
 0xc9e   :  { %1632 = vst.msk [vmem:[#allocation2 + $0x8] sm:$0xff] %vm58_vm0, %v1630_v47  ;;  %v1629_v49 = vadd.f32 %v1621_v48, %v2249_v4 }
 0xca0   :  { %1631 = vst.msk [vmem:[#allocation2] sm:$0xff] %vm58_vm0, %v1629_v49 }
 0xca1   :  { %1974 = shalt.err (!%p1971_p4)
}
 0xca2   :  { %s1998_s13 = smov 128   ;;  %s1999_s4 = smov 8  }
 0xca3   :  { %1644 = dma.vmem_to_hbm [thread:$0]  %s1639_s26, 256, %s2354_s14, [#allocation3], %s1998_s13, %s1998_s13, %s1999_s4  }
 0xca4   :  { %1983 = dma.done.wait [#allocation3], 256  }
 0xca5   :  { %1984 = vsyncadd [#allocation3], 4294967040 }
 0xca6   :  { %1648 = vsyncpa [#allocation3], 1 }

</bundles_post_ra>
